<compile_context>
chip_gen: v6e
topology: v6e:2x2x1
jax: 0.10.0
libtpu: 0.0.40
codegen_flags: <defaults>
</compile_context>

<pallas_src>
import jax
import jax.numpy as jnp
from jax.experimental import pallas as pl
from jax.experimental.pallas import tpu as pltpu


def _net_kernel(x_ref, w1_ref, b1_ref, w2_ref, b2_ref, o_ref, acc_ref):
    k = pl.program_id(1)

    # Initialize the fc1 accumulator on the first K step.
    @pl.when(k == 0)
    def _():
        acc_ref[...] = jnp.zeros_like(acc_ref)

    # Partial fc1: (tb, tk) @ (tk, H) -> (tb, H), bf16 inputs, f32 accumulate.
    acc_ref[...] += jnp.dot(
        x_ref[...], w1_ref[...], preferred_element_type=jnp.float32
    )

    # Epilogue on the last K step: bias + ReLU, fc2 (VPU reduce), bias, sigmoid.
    @pl.when(k == pl.num_programs(1) - 1)
    def _():
        h = acc_ref[...] + b1_ref[...]                     # (tb, H) + (1, H)
        h = jnp.maximum(h, 0.0)                            # ReLU
        # fc2: 1-column RHS -> VPU multiply + lane reduction (keeps MXU free).
        out = jnp.sum(h * w2_ref[...], axis=-1, keepdims=True)   # (tb, 1)
        out = out + b2_ref[...]                            # (tb, 1) + (1, 1)
        out = 1.0 / (1.0 + jnp.exp(-out))                  # Sigmoid (f32, exact)
        o_ref[...] = out.astype(o_ref.dtype)


def _round_up(x, m):
    return (x + m - 1) // m * m


def net_forward(x, w1_t, b1, w2, b2, *, tb=None, tk=16384,
                compute_dtype=jnp.bfloat16,
                vmem_limit_bytes=48 * 1024 * 1024):
    """Forward pass of Net.

    Args:
      x:    (B, K) activations (any float dtype; streamed as `compute_dtype`).
      w1_t: (K, H) fc1 weight, pre-transposed from PyTorch's (H, K).
      b1:   (H,) or (1, H) fc1 bias.
      w2:   (1, H) fc2 weight (PyTorch layout, out=1, in=H).
      b2:   (1,) or (1, 1) fc2 bias.
      tb:   batch tile (default: full padded batch, capped at 256).
      tk:   K tile (default 16384; clamped to padded K, multiple of 128).
    Returns:
      (B, 1) float32 sigmoid outputs.
    """
    B, K = x.shape
    K2, H = w1_t.shape
    assert K2 == K, "w1_t must be (K, H)"

    # Batch tile: multiple of 8 sublanes; full batch (<=256) streams W1 once.
    if tb is None:
        tb = min(256, _round_up(B, 8))
    tb = _round_up(tb, 8)

    # K tile: multiple of 128 lanes, no larger than the padded K.
    tk = min(_round_up(tk, 128), _round_up(K, 128))

    Bp = _round_up(B, tb)
    Kp = _round_up(K, tk)

    # Stream x / W1 in the (halved-bandwidth) compute dtype; zero-pad to tiles.
    xc = x.astype(compute_dtype)
    w1c = w1_t.astype(compute_dtype)
    if Bp != B or Kp != K:
        xc = jnp.pad(xc, ((0, Bp - B), (0, Kp - K)))
    if Kp != K:
        w1c = jnp.pad(w1c, ((0, Kp - K), (0, 0)))

    b1f = jnp.asarray(b1, dtype=jnp.float32).reshape(1, H)
    w2f = jnp.asarray(w2, dtype=jnp.float32).reshape(1, H)
    b2f = jnp.asarray(b2, dtype=jnp.float32).reshape(1, 1)

    grid = (Bp // tb, Kp // tk)
    out = pl.pallas_call(
        _net_kernel,
        out_shape=jax.ShapeDtypeStruct((Bp, 1), jnp.float32),
        grid_spec=pltpu.PrefetchScalarGridSpec(
            num_scalar_prefetch=0,
            grid=grid,
            in_specs=[
                pl.BlockSpec((tb, tk), lambda i, k: (i, k)),   # x tile (bf16)
                pl.BlockSpec((tk, H), lambda i, k: (k, 0)),    # W1^T tile (bf16)
                pl.BlockSpec((1, H), lambda i, k: (0, 0)),     # b1 (f32)
                pl.BlockSpec((1, H), lambda i, k: (0, 0)),     # W2 row (f32)
                pl.BlockSpec((1, 1), lambda i, k: (0, 0)),     # b2 (f32)
            ],
            out_specs=pl.BlockSpec((tb, 1), lambda i, k: (i, 0)),
            scratch_shapes=[pltpu.VMEM((tb, H), jnp.float32)],
        ),
        compiler_params=pltpu.CompilerParams(
            dimension_semantics=("parallel", "arbitrary"),
            vmem_limit_bytes=vmem_limit_bytes,
        ),
    )(xc, w1c, b1f, w2f, b2f)
    return out[:B]


def _reference(x, w1_t, b1, w2, b2, compute_dtype=jnp.bfloat16):
    # Reference uses the same bf16-cast inputs (upcast to f32 for the math),
    # matching the kernel's bf16-storage / f32-accumulate numerics.
    xr = x.astype(compute_dtype).astype(jnp.float32)
    w1r = w1_t.astype(compute_dtype).astype(jnp.float32)
    b1f = jnp.asarray(b1, jnp.float32).reshape(1, -1)
    w2f = jnp.asarray(w2, jnp.float32).reshape(1, -1)
    b2f = jnp.asarray(b2, jnp.float32).reshape(1, 1)
    h = jnp.maximum(xr @ w1r + b1f, 0.0)
    return jax.nn.sigmoid(h @ w2f.T + b2f)


if __name__ == "__main__":
    # Small shapes consistent with the module (real model: input_size=188160,
    # hidden=128, output=1).  The second case exercises the K/B padding path
    # that the real, non-power-of-two input_size needs.
    hidden_size = 128
    output_size = 1

    key = jax.random.PRNGKey(0)

    for batch, input_size in ((8, 2048), (5, 2000)):
        kx, kw1, kb1, kw2, kb2 = jax.random.split(
            jax.random.fold_in(key, input_size), 5)

        x = jax.random.normal(kx, (batch, input_size), dtype=jnp.float32)

        # PyTorch nn.Linear weights are (out, in); fc1 is passed pre-transposed.
        w1_t = jax.random.normal(
            kw1, (input_size, hidden_size), dtype=jnp.float32) * 0.02
        b1 = jax.random.normal(kb1, (hidden_size,), dtype=jnp.float32) * 0.02
        w2 = jax.random.normal(
            kw2, (output_size, hidden_size), dtype=jnp.float32) * 0.02
        b2 = jax.random.normal(kb2, (output_size,), dtype=jnp.float32) * 0.02

        out = jax.block_until_ready(net_forward(x, w1_t, b1, w2, b2))
        ref = jax.block_until_ready(_reference(x, w1_t, b1, w2, b2))

        assert out.shape == (batch, output_size), out.shape
        assert jnp.allclose(out, ref, atol=1e-4, rtol=1e-4), (
            f"mismatch vs reference for shape {(batch, input_size)}")

    print("KERNEL_OK")
</pallas_src>

<mosaic_0001>
module attributes {stable_mosaic.version = 11 : i64} {
  func.func @_net_kernel(%arg0: i32, %arg1: i32, %arg2: memref<8x2048xbf16, #tpu.memory_space<vmem>>, %arg3: memref<2048x128xbf16, #tpu.memory_space<vmem>>, %arg4: memref<1x128xf32, #tpu.memory_space<vmem>>, %arg5: memref<1x128xf32, #tpu.memory_space<vmem>>, %arg6: memref<1x1xf32, #tpu.memory_space<vmem>>, %arg7: memref<8x1xf32, #tpu.memory_space<vmem>>, %arg8: memref<8x128xf32, #tpu.memory_space<vmem>>) attributes {dimension_semantics = [#tpu.dimension_semantics<parallel>, #tpu.dimension_semantics<arbitrary>], iteration_bounds = array<i64: 1, 1>, scalar_prefetch = 0 : i64, scratch_operands = 1 : i64, tpu.core_type = #tpu.core_type<tc>, window_params = [{transform_indices = @transform_0, window_bounds = array<i64: 8, 2048>}, {transform_indices = @transform_1, window_bounds = array<i64: 2048, 128>}, {pipeline_mode = #tpu.pipeline_mode<synchronous>, transform_indices = @transform_2, window_bounds = array<i64: 1, 128>}, {pipeline_mode = #tpu.pipeline_mode<synchronous>, transform_indices = @transform_3, window_bounds = array<i64: 1, 128>}, {pipeline_mode = #tpu.pipeline_mode<synchronous>, transform_indices = @transform_4, window_bounds = array<i64: 1, 1>}, {transform_indices = @transform_5, window_bounds = array<i64: 8, 1>}]} {
    %c0_i32 = arith.constant 0 : i32
    %0 = arith.cmpi eq, %arg1, %c0_i32 : i32
    %1 = arith.extui %0 : i1 to i32
    %c0_i32_0 = arith.constant 0 : i32
    %2 = arith.cmpi ne, %1, %c0_i32_0 : i32
    scf.if %2 {
      %cst_10 = arith.constant 0.000000e+00 : f32
      %12 = vector.broadcast %cst_10 : f32 to vector<8x128xf32>
      %c0_11 = arith.constant 0 : index
      %c0_12 = arith.constant 0 : index
      %13 = vector.load %arg8[%c0_11, %c0_12] : memref<8x128xf32, #tpu.memory_space<vmem>>, vector<8x128xf32>
      tpu.vector_store %arg8[%c0_11, %c0_12], %12 {strides = array<i32>} : memref<8x128xf32, #tpu.memory_space<vmem>>, vector<8x128xf32>,
    } else {
    }
    %c0 = arith.constant 0 : index
    %c0_1 = arith.constant 0 : index
    %3 = vector.load %arg8[%c0, %c0_1] : memref<8x128xf32, #tpu.memory_space<vmem>>, vector<8x128xf32>
    %c0_2 = arith.constant 0 : index
    %c0_3 = arith.constant 0 : index
    %4 = vector.load %arg2[%c0_2, %c0_3] : memref<8x2048xbf16, #tpu.memory_space<vmem>>, vector<8x2048xbf16>
    %c0_4 = arith.constant 0 : index
    %c0_5 = arith.constant 0 : index
    %5 = vector.load %arg3[%c0_4, %c0_5] : memref<2048x128xbf16, #tpu.memory_space<vmem>>, vector<2048x128xbf16>
    %cst = arith.constant dense<0.000000e+00> : vector<8x128xf32>
    %6 = tpu.matmul %4, %5, %cst {dimension_numbers = #tpu.dot_dimension_numbers<[1], [0], [0], [1], [0, 0, 1, 1], [], []>} : vector<8x2048xbf16>, vector<2048x128xbf16>, vector<8x128xf32> -> vector<8x128xf32>
    %7 = arith.addf %3, %6 : vector<8x128xf32>
    %c0_6 = arith.constant 0 : index
    %c0_7 = arith.constant 0 : index
    %8 = vector.load %arg8[%c0_6, %c0_7] : memref<8x128xf32, #tpu.memory_space<vmem>>, vector<8x128xf32>
    tpu.vector_store %arg8[%c0_6, %c0_7], %7 {strides = array<i32>} : memref<8x128xf32, #tpu.memory_space<vmem>>, vector<8x128xf32>,
    %c0_i32_8 = arith.constant 0 : i32
    %9 = arith.cmpi eq, %arg1, %c0_i32_8 : i32
    %10 = arith.extui %9 : i1 to i32
    %c0_i32_9 = arith.constant 0 : i32
    %11 = arith.cmpi ne, %10, %c0_i32_9 : i32
    scf.if %11 {
      %c0_10 = arith.constant 0 : index
      %c0_11 = arith.constant 0 : index
      %12 = vector.load %arg8[%c0_10, %c0_11] : memref<8x128xf32, #tpu.memory_space<vmem>>, vector<8x128xf32>
      %c0_12 = arith.constant 0 : index
      %c0_13 = arith.constant 0 : index
      %13 = vector.load %arg4[%c0_12, %c0_13] : memref<1x128xf32, #tpu.memory_space<vmem>>, vector<1x128xf32>
      %14 = vector.broadcast %13 : vector<1x128xf32> to vector<8x128xf32>
      %15 = arith.addf %12, %14 : vector<8x128xf32>
      %cst_14 = arith.constant 0.000000e+00 : f32
      %16 = vector.broadcast %cst_14 : f32 to vector<8x128xf32>
      %17 = arith.maximumf %15, %16 : vector<8x128xf32>
      %c0_15 = arith.constant 0 : index
      %c0_16 = arith.constant 0 : index
      %18 = vector.load %arg5[%c0_15, %c0_16] : memref<1x128xf32, #tpu.memory_space<vmem>>, vector<1x128xf32>
      %19 = vector.broadcast %18 : vector<1x128xf32> to vector<8x128xf32>
      %20 = arith.mulf %17, %19 : vector<8x128xf32>
      %cst_17 = arith.constant dense<0.000000e+00> : vector<8xf32>
      %21 = vector.multi_reduction <add>, %20, %cst_17 [1] : vector<8x128xf32> to vector<8xf32>
      %22 = vector.shape_cast %21 : vector<8xf32> to vector<8x1xf32>
      %c0_18 = arith.constant 0 : index
      %c0_19 = arith.constant 0 : index
      %23 = vector.load %arg6[%c0_18, %c0_19] : memref<1x1xf32, #tpu.memory_space<vmem>>, vector<1x1xf32>
      %24 = vector.broadcast %23 : vector<1x1xf32> to vector<8x1xf32>
      %25 = arith.addf %22, %24 : vector<8x1xf32>
      %cst_20 = arith.constant 0.000000e+00 : f32
      %26 = vector.broadcast %cst_20 : f32 to vector<8x1xf32>
      %27 = arith.subf %26, %25 : vector<8x1xf32>
      %28 = math.exp %27 : vector<8x1xf32>
      %cst_21 = arith.constant 1.000000e+00 : f32
      %29 = vector.broadcast %cst_21 : f32 to vector<8x1xf32>
      %30 = arith.addf %29, %28 : vector<8x1xf32>
      %cst_22 = arith.constant 1.000000e+00 : f32
      %31 = vector.broadcast %cst_22 : f32 to vector<8x1xf32>
      %32 = arith.divf %31, %30 : vector<8x1xf32>
      %c0_23 = arith.constant 0 : index
      %c0_24 = arith.constant 0 : index
      %33 = vector.load %arg7[%c0_23, %c0_24] : memref<8x1xf32, #tpu.memory_space<vmem>>, vector<8x1xf32>
      tpu.vector_store %arg7[%c0_23, %c0_24], %32 {strides = array<i32>} : memref<8x1xf32, #tpu.memory_space<vmem>>, vector<8x1xf32>,
    } else {
    }
    return
  }
  func.func @transform_0(%arg0: i32, %arg1: i32) -> (i32, i32) {
    %c0_i32 = arith.constant 0 : i32
    return %arg0, %arg1 : i32, i32
  }
  func.func @transform_1(%arg0: i32, %arg1: i32) -> (i32, i32) {
    %c0_i32 = arith.constant 0 : i32
    %c0_i32_0 = arith.constant 0 : i32
    return %arg1, %c0_i32 : i32, i32
  }
  func.func @transform_2(%arg0: i32, %arg1: i32) -> (i32, i32) {
    %c0_i32 = arith.constant 0 : i32
    %c0_i32_0 = arith.constant 0 : i32
    %c0_i32_1 = arith.constant 0 : i32
    return %c0_i32, %c0_i32_0 : i32, i32
  }
  func.func @transform_3(%arg0: i32, %arg1: i32) -> (i32, i32) {
    %c0_i32 = arith.constant 0 : i32
    %c0_i32_0 = arith.constant 0 : i32
    %c0_i32_1 = arith.constant 0 : i32
    return %c0_i32, %c0_i32_0 : i32, i32
  }
  func.func @transform_4(%arg0: i32, %arg1: i32) -> (i32, i32) {
    %c0_i32 = arith.constant 0 : i32
    %c0_i32_0 = arith.constant 0 : i32
    %c0_i32_1 = arith.constant 0 : i32
    return %c0_i32, %c0_i32_0 : i32, i32
  }
  func.func @transform_5(%arg0: i32, %arg1: i32) -> (i32, i32) {
    %c0_i32 = arith.constant 0 : i32
    %c0_i32_0 = arith.constant 0 : i32
    return %arg0, %c0_i32 : i32, i32
  }
}

</mosaic_0001>

<bundles_post_ra>
// kernel: tpu_custom_call.1
= control target key start
LH: loop header
LB: loop body
LE: loop exit
PB: predicated region body
PF: predicated region fallthrough
CT: control target
= control target key end

     0   :  { %s2081_s0 = inlined_call_operand.hbm [shape: bf16[8,2048], index: 0, kind: input, shape index: {}]   ;;  %s2082_s1 = inlined_call_operand.hbm [shape: bf16[2048,128], index: 1, kind: input, shape index: {}]   ;;  %s2083_s2 = inlined_call_operand.vmem [shape: f32[1,128], index: 2, kind: input, shape index: {}]   ;;  %s2084_s3 = inlined_call_operand.vmem [shape: f32[1,128], index: 3, kind: input, shape index: {}]   ;;  %s2085_s4 = inlined_call_operand.<no memory space> [shape: f32[1,1], index: 4, kind: input, shape index: {}]   ;;  %s2086_s5 = inlined_call_operand.vmem [shape: f32[8,1], index: 5, kind: output, shape index: {}]  }
   0x1   :  { %v10_v0 = vstv %s2085_s4 }
   0x2   :  { %11 = vst [vmem:[#allocation3] sm:$0x1] %v10_v0 }
   0x3   :  { %12 = vsyncpa [#allocation5], 0 }
   0x4   :  { %13 = vsyncpa [#allocation7], 0  ;;  %s2029_s20 = smov [#allocation4]   ;;  %s2030_s22 = smov [#allocation6]  }
   0x5   :  { %s20_s21 = sshll.u32 %s2029_s20, 4  ;;  %s29_s23 = sshll.u32 %s2030_s22, 4  ;;  %s21_s21 = int_to_ptr.vmem [resolvable:$true] %s20_s21  ;;  %s30_s23 = int_to_ptr.vmem [resolvable:$true] %s29_s23 }
   0x6   :  { %s1993_s24 = scalar_lea.vmem %s21_s21, 1024  ;;  %p1998_p1 = scmp.lt.s32.totalorder %s21_s21, %s21_s21 }
   0x7   :  { %p1994_p0 = scmp.ne.s32.totalorder %s21_s21, %s1993_s24  ;;  %p1999_p2 = scmp.lt.s32.totalorder %s1993_s24, %s1993_s24 }
   0x9   :  { %p2000_p3 = por %p1999_p2, %p1998_p1 }
   0xb   :  { %p2001_p4 = pnand %p2000_p3, %p1994_p0 }
   0xd   :  { %2004 = shalt.err (!%p2001_p4)
}
   0xe   :  { %23 = dma.hbm_to_vmem [thread:$0]  %s2081_s0, 1024, %s21_s21, [#allocation5]  }
   0xf   :  { %s2013_s4 = scalar_lea.vmem %s30_s23, 16384  ;;  %p2018_p6 = scmp.lt.s32.totalorder %s30_s23, %s30_s23 }
  0x10   :  { %p2014_p5 = scmp.ne.s32.totalorder %s30_s23, %s2013_s4  ;;  %p2019_p7 = scmp.lt.s32.totalorder %s2013_s4, %s2013_s4 }
  0x12   :  { %p2020_p8 = por %p2019_p7, %p2018_p6 }
  0x14   :  { %p2021_p9 = pnand %p2020_p8, %p2014_p5 }
  0x16   :  { %2024 = shalt.err (!%p2021_p9)
}
  0x17   :  { %s2031_s27 = smov 64   ;;  %s2032_s28 = smov 4  }
  0x18   :  { %35 = dma.hbm_to_vmem [thread:$0]  %s2082_s1, 16384, %s30_s23, [#allocation7], %s2031_s27, %s2031_s27, %s2032_s28  }
  0x19   :  { %2025 = dma.done.wait [#allocation5], 1024  }
  0x1a   :  { %2026 = vsyncadd [#allocation5], 4294966272 }
  0x1b   :  { %2027 = dma.done.wait [#allocation7], 16384  }
  0x1c   :  { %2028 = vsyncadd [#allocation7], 4294950912  ;;  %v1837_v1 = vld [vmem:[#allocation6 + $0x78] sm:$0xff]   ;;  %v1841_v5 = vld [vmem:[#allocation6 + $0x70] sm:$0xff]   ;;  %vm1502_vm0 = vcmask 7168  }
  0x1d   :  { %v1838_v2 = vld [vmem:[#allocation6 + $0xf8] sm:$0xff]   ;;  %1657 = vmatprep.subr.bf16.mxu0 %v1837_v1  ;;  %v1842_v6 = vld [vmem:[#allocation6 + $0xf0] sm:$0xff]   ;;  %v1845_v9 = vld [vmem:[#allocation6 + $0x68] sm:$0xff]  }
  0x1e   :  { %v1839_v3 = vld [vmem:[#allocation6 + $0x38] sm:$0xff]   ;;  %1679 = vmatprep.subr.bf16.mxu1 %v1838_v2  ;;  %v1843_v7 = vld [vmem:[#allocation6 + $0x30] sm:$0xff]   ;;  %v1846_v10 = vld [vmem:[#allocation6 + $0xe8] sm:$0xff]  }
  0x1f   :  { %v1840_v4 = vld [vmem:[#allocation6 + $0xb8] sm:$0xff]   ;;  %1658 = vmatpush3.bf16.msra.mxu0 %v1839_v3  ;;  %v1844_v8 = vld [vmem:[#allocation6 + $0xb0] sm:$0xff]   ;;  %v1847_v11 = vld [vmem:[#allocation6 + $0x28] sm:$0xff]  }
  0x20   :  { %1680 = vmatpush3.bf16.msra.mxu1 %v1840_v4  ;;  %1659 = vmatprep.subr.bf16.mxu0 %v1841_v5  ;;  %v1848_v12 = vld [vmem:[#allocation6 + $0xa8] sm:$0xff]   ;;  %v1849_v13 = vld [vmem:[#allocation6 + $0x60] sm:$0xff]   ;;  %v1853_v17 = vld [vmem:[#allocation6 + $0x58] sm:$0xff]  }
  0x21   :  { %1681 = vmatprep.subr.bf16.mxu1 %v1842_v6  ;;  %v1850_v14 = vld [vmem:[#allocation6 + $0xe0] sm:$0xff]   ;;  %v1854_v18 = vld [vmem:[#allocation6 + $0xd8] sm:$0xff]   ;;  %v1857_v21 = vld [vmem:[#allocation6 + $0x50] sm:$0xff]  }
  0x22   :  { %v1851_v15 = vld [vmem:[#allocation6 + $0x20] sm:$0xff]   ;;  %v1855_v19 = vld [vmem:[#allocation6 + $0x18] sm:$0xff]   ;;  %v1858_v22 = vld [vmem:[#allocation6 + $0xd0] sm:$0xff]  }
  0x23   :  { %1660 = vmatpush3.bf16.msra.mxu0 %v1843_v7  ;;  %v1852_v16 = vld [vmem:[#allocation6 + $0xa0] sm:$0xff]   ;;  %v1856_v20 = vld [vmem:[#allocation6 + $0x98] sm:$0xff]   ;;  %v1859_v23 = vld [vmem:[#allocation6 + $0x10] sm:$0xff]  }
  0x24   :  { %1682 = vmatpush3.bf16.msra.mxu1 %v1844_v8  ;;  %1661 = vmatprep.subr.bf16.mxu0 %v1845_v9  ;;  %v1860_v24 = vld [vmem:[#allocation6 + $0x90] sm:$0xff]   ;;  %v1861_v25 = vld [vmem:[#allocation6 + $0x48] sm:$0xff]   ;;  %v1865_v29 = vld [vmem:[#allocation6 + $0x40] sm:$0xff]  }
  0x25   :  { %1683 = vmatprep.subr.bf16.mxu1 %v1846_v10  ;;  %v1862_v26 = vld [vmem:[#allocation6 + $0xc8] sm:$0xff]   ;;  %v1866_v30 = vld [vmem:[#allocation6 + $0xc0] sm:$0xff]   ;;  %v1873_v39 = vld [vmem:[#allocation6 + $0x178] sm:$0xff]  }
  0x26   :  { %v1863_v27 = vld [vmem:[#allocation6 + $0x8] sm:$0xff]   ;;  %v1867_v31 = vld [vmem:[#allocation6] sm:$0xff]   ;;  %v1874_v40 = vld [vmem:[#allocation6 + $0x1f8] sm:$0xff]  }
  0x27   :  { %1662 = vmatpush3.bf16.msra.mxu0 %v1847_v11  ;;  %v1864_v28 = vld [vmem:[#allocation6 + $0x88] sm:$0xff]   ;;  %v1868_v32 = vld [vmem:[#allocation6 + $0x80] sm:$0xff]   ;;  %v1875_v41 = vld [vmem:[#allocation6 + $0x138] sm:$0xff]  }
  0x28   :  { %1684 = vmatpush3.bf16.msra.mxu1 %v1848_v12  ;;  %1663 = vmatprep.subr.bf16.mxu0 %v1849_v13  ;;  %v55_v33 = vld [vmem:[#allocation4] sm:$0xff]  ;;  %v56_v34 = vld [vmem:[#allocation4 + $0x8] sm:$0xff]  ;;  %v1876_v42 = vld [vmem:[#allocation6 + $0x1b8] sm:$0xff]  }
  0x29   :  { %1685 = vmatprep.subr.bf16.mxu1 %v1850_v14  ;;  %v1510_v35 = vcombine.low %v55_v33, %v55_v33  ;;  %v1511_v36 = vcombine.high %v55_v33, %v55_v33  ;;  %v1512_v37 = vcombine.low %v56_v34, %v56_v34  ;;  %v1513_v38 = vcombine.high %v56_v34, %v56_v34  ;;  %v1877_v43 = vld [vmem:[#allocation6 + $0x170] sm:$0xff]   ;;  %v1881_v47 = vld [vmem:[#allocation6 + $0x168] sm:$0xff]   ;;  %v1885_v51 = vld [vmem:[#allocation6 + $0x160] sm:$0xff]  }
  0x2a   :  { %v1878_v44 = vld [vmem:[#allocation6 + $0x1f0] sm:$0xff]   ;;  %v1882_v48 = vld [vmem:[#allocation6 + $0x1e8] sm:$0xff]   ;;  %v1886_v52 = vld [vmem:[#allocation6 + $0x1e0] sm:$0xff]  }
  0x2b   :  { %1664 = vmatpush3.bf16.msra.mxu0 %v1851_v15  ;;  %1175 = vmatprep.mubr.bf16.mxu0 %v1511_v36  ;;  %v1879_v45 = vld [vmem:[#allocation6 + $0x130] sm:$0xff]   ;;  %v1883_v49 = vld [vmem:[#allocation6 + $0x128] sm:$0xff]   ;;  %v1887_v53 = vld [vmem:[#allocation6 + $0x120] sm:$0xff]  }
  0x2c   :  { %1686 = vmatpush3.bf16.msra.mxu1 %v1852_v16  ;;  %1665 = vmatprep.subr.bf16.mxu0 %v1853_v17  ;;  %v1880_v46 = vld [vmem:[#allocation6 + $0x1b0] sm:$0xff]   ;;  %v1884_v50 = vld [vmem:[#allocation6 + $0x1a8] sm:$0xff]   ;;  %v1888_v54 = vld [vmem:[#allocation6 + $0x1a0] sm:$0xff]  }
  0x2d   :  { %1687 = vmatprep.subr.bf16.mxu1 %v1854_v18  ;;  %1215 = vmatprep.mubr.bf16.mxu1 %v1513_v38  ;;  %v1889_v55 = vld [vmem:[#allocation6 + $0x158] sm:$0xff]   ;;  %v1893_v59 = vld [vmem:[#allocation6 + $0x150] sm:$0xff]   ;;  %v1897_v63 = vld [vmem:[#allocation6 + $0x148] sm:$0xff]  }
  0x2e   :  { %v1890_v56 = vld [vmem:[#allocation6 + $0x1d8] sm:$0xff]   ;;  %v1894_v60 = vld [vmem:[#allocation6 + $0x1d0] sm:$0xff]   ;;  %v1898_v0 = vld [vmem:[#allocation6 + $0x1c8] sm:$0xff]  }
  0x2f   :  { %1666 = vmatpush3.bf16.msra.mxu0 %v1855_v19  ;;  %v1891_v57 = vld [vmem:[#allocation6 + $0x118] sm:$0xff]   ;;  %v1895_v61 = vld [vmem:[#allocation6 + $0x110] sm:$0xff]   ;;  %v1899_v1 = vld [vmem:[#allocation6 + $0x108] sm:$0xff]  }
  0x30   :  { %1688 = vmatpush3.bf16.msra.mxu1 %v1856_v20  ;;  %1667 = vmatprep.subr.bf16.mxu0 %v1857_v21  ;;  %v1892_v58 = vld [vmem:[#allocation6 + $0x198] sm:$0xff]   ;;  %v1896_v62 = vld [vmem:[#allocation6 + $0x190] sm:$0xff]   ;;  %v1900_v2 = vld [vmem:[#allocation6 + $0x188] sm:$0xff]  }
  0x31   :  { %1689 = vmatprep.subr.bf16.mxu1 %v1858_v22  ;;  %v1901_v3 = vld [vmem:[#allocation6 + $0x140] sm:$0xff]   ;;  %v57_v7 = vld [vmem:[#allocation4 + $0x10] sm:$0xff]  ;;  %v58_v10 = vld [vmem:[#allocation4 + $0x18] sm:$0xff] }
  0x32   :  { %v1902_v4 = vld [vmem:[#allocation6 + $0x1c0] sm:$0xff]   ;;  %v1514_v8 = vcombine.low %v57_v7, %v57_v7  ;;  %v1515_v9 = vcombine.high %v57_v7, %v57_v7  ;;  %v1516_v11 = vcombine.low %v58_v10, %v58_v10  ;;  %v1517_v12 = vcombine.high %v58_v10, %v58_v10  ;;  %v1909_v13 = vld [vmem:[#allocation6 + $0x278] sm:$0xff]   ;;  %v1913_v17 = vld [vmem:[#allocation6 + $0x270] sm:$0xff]  }
  0x33   :  { %1668 = vmatpush3.bf16.msra.mxu0 %v1859_v23  ;;  %v1903_v5 = vld [vmem:[#allocation6 + $0x100] sm:$0xff]   ;;  %v1910_v14 = vld [vmem:[#allocation6 + $0x2f8] sm:$0xff]   ;;  %v1914_v18 = vld [vmem:[#allocation6 + $0x2f0] sm:$0xff]  }
  0x34   :  { %1690 = vmatpush3.bf16.msra.mxu1 %v1860_v24  ;;  %1669 = vmatprep.subr.bf16.mxu0 %v1861_v25  ;;  %v1904_v6 = vld [vmem:[#allocation6 + $0x180] sm:$0xff]   ;;  %v1911_v15 = vld [vmem:[#allocation6 + $0x238] sm:$0xff]   ;;  %v1915_v19 = vld [vmem:[#allocation6 + $0x230] sm:$0xff]  }
  0x35   :  { %1691 = vmatprep.subr.bf16.mxu1 %v1862_v26  ;;  %v1912_v16 = vld [vmem:[#allocation6 + $0x2b8] sm:$0xff]   ;;  %v1916_v20 = vld [vmem:[#allocation6 + $0x2b0] sm:$0xff]   ;;  %v1917_v21 = vld [vmem:[#allocation6 + $0x268] sm:$0xff]  }
  0x36   :  { %v1918_v22 = vld [vmem:[#allocation6 + $0x2e8] sm:$0xff]   ;;  %v1921_v25 = vld [vmem:[#allocation6 + $0x260] sm:$0xff]   ;;  %v1929_v33 = vld [vmem:[#allocation6 + $0x250] sm:$0xff]  }
  0x37   :  { %1670 = vmatpush3.bf16.msra.mxu0 %v1863_v27  ;;  %v1919_v23 = vld [vmem:[#allocation6 + $0x228] sm:$0xff]   ;;  %v1922_v26 = vld [vmem:[#allocation6 + $0x2e0] sm:$0xff]   ;;  %v1930_v34 = vld [vmem:[#allocation6 + $0x2d0] sm:$0xff]  }
  0x38   :  { %1692 = vmatpush3.bf16.msra.mxu1 %v1864_v28  ;;  %1671 = vmatprep.subr.bf16.mxu0 %v1865_v29  ;;  %v1920_v24 = vld [vmem:[#allocation6 + $0x2a8] sm:$0xff]   ;;  %v1923_v27 = vld [vmem:[#allocation6 + $0x220] sm:$0xff]   ;;  %v1925_v29 = vld [vmem:[#allocation6 + $0x258] sm:$0xff]  }
  0x39   :  { %1693 = vmatprep.subr.bf16.mxu1 %v1866_v30  ;;  %v1924_v28 = vld [vmem:[#allocation6 + $0x2a0] sm:$0xff]   ;;  %v1926_v30 = vld [vmem:[#allocation6 + $0x2d8] sm:$0xff]   ;;  %v1932_v36 = vld [vmem:[#allocation6 + $0x290] sm:$0xff]  }
  0x3a   :  { %v1934_v38 = vld [vmem:[#allocation6 + $0x2c8] sm:$0xff]   ;;  %v1965_v7 = vld [vmem:[#allocation6 + $0x350] sm:$0xff]  }
  0x3b   :  { %1672 = vmatpush3.bf16.msra.mxu0 %v1867_v31  ;;  %v1927_v31 = vld [vmem:[#allocation6 + $0x218] sm:$0xff]   ;;  %v1968_v10 = vld [vmem:[#allocation6 + $0x390] sm:$0xff]  }
  0x3c   :  { %1694 = vmatpush3.bf16.msra.mxu1 %v1868_v32  ;;  %1701 = vmatprep.subr.bf16.mxu0 %v1873_v39  ;;  %v1928_v32 = vld [vmem:[#allocation6 + $0x298] sm:$0xff]   ;;  %v1935_v39 = vld [vmem:[#allocation6 + $0x208] sm:$0xff]  }
  0x3d   :  { %1723 = vmatprep.subr.bf16.mxu1 %v1874_v40  ;;  %v1936_v40 = vld [vmem:[#allocation6 + $0x288] sm:$0xff]  }
  0x3e   :  { %1176 = vmatmul.mubr.bf16.vlgmr.msra.gmra.mxu0 %v1510_v35  ;;  %v1931_v35 = vld [vmem:[#allocation6 + $0x210] sm:$0xff]  }
  0x3f   :  { %1216 = vmatmul.mubr.bf16.vlgmr.msra.gmra.mxu1 %v1512_v37  ;;  %1702 = vmatpush3.bf16.msra.mxu0 %v1875_v41  ;;  %v1933_v37 = vld [vmem:[#allocation6 + $0x248] sm:$0xff]   ;;  %v1937_v41 = vld [vmem:[#allocation6 + $0x240] sm:$0xff]  }
  0x40   :  { %1724 = vmatpush3.bf16.msra.mxu1 %v1876_v42  ;;  %1703 = vmatprep.subr.bf16.mxu0 %v1877_v43  ;;  %v1938_v42 = vld [vmem:[#allocation6 + $0x2c0] sm:$0xff]  }
  0x41   :  { %1725 = vmatprep.subr.bf16.mxu1 %v1878_v44  ;;  %1255 = vmatprep.mubr.bf16.mxu0 %v1515_v9  ;;  %v1939_v43 = vld [vmem:[#allocation6 + $0x200] sm:$0xff]   ;;  %v1967_v9 = vld [vmem:[#allocation6 + $0x310] sm:$0xff]  }
  0x42   :  { %1295 = vmatprep.mubr.bf16.mxu1 %v1517_v12  ;;  %v1940_v44 = vld [vmem:[#allocation6 + $0x280] sm:$0xff]   ;;  %v1970_v12 = vld [vmem:[#allocation6 + $0x3c8] sm:$0xff]  }
  0x43   :  { %1704 = vmatpush3.bf16.msra.mxu0 %v1879_v45  ;;  %v59_v45 = vld [vmem:[#allocation4 + $0x20] sm:$0xff] }
  0x44   :  { %1726 = vmatpush3.bf16.msra.mxu1 %v1880_v46  ;;  %1705 = vmatprep.subr.bf16.mxu0 %v1881_v47  ;;  %v60_v46 = vld [vmem:[#allocation4 + $0x28] sm:$0xff]  ;;  %v1518_v47 = vcombine.low %v59_v45, %v59_v45 }
  0x45   :  { %1727 = vmatprep.subr.bf16.mxu1 %v1882_v48  ;;  %v1519_v48 = vcombine.high %v59_v45, %v59_v45 }
  0x47   :  { %1706 = vmatpush3.bf16.msra.mxu0 %v1883_v49  ;;  %v1520_v49 = vcombine.low %v60_v46, %v60_v46 }
  0x48   :  { %1728 = vmatpush3.bf16.msra.mxu1 %v1884_v50  ;;  %1707 = vmatprep.subr.bf16.mxu0 %v1885_v51  ;;  %v1521_v50 = vcombine.high %v60_v46, %v60_v46  ;;  %v1945_v51 = vld [vmem:[#allocation6 + $0x378] sm:$0xff]  }
  0x49   :  { %1729 = vmatprep.subr.bf16.mxu1 %v1886_v52  ;;  %v1946_v52 = vld [vmem:[#allocation6 + $0x3f8] sm:$0xff]  }
  0x4b   :  { %1708 = vmatpush3.bf16.msra.mxu0 %v1887_v53  ;;  %v1947_v53 = vld [vmem:[#allocation6 + $0x338] sm:$0xff]  }
  0x4c   :  { %1730 = vmatpush3.bf16.msra.mxu1 %v1888_v54  ;;  %1709 = vmatprep.subr.bf16.mxu0 %v1889_v55  ;;  %v1948_v54 = vld [vmem:[#allocation6 + $0x3b8] sm:$0xff]   ;;  %v1949_v55 = vld [vmem:[#allocation6 + $0x370] sm:$0xff]  }
  0x4d   :  { %1731 = vmatprep.subr.bf16.mxu1 %v1890_v56  ;;  %v1950_v56 = vld [vmem:[#allocation6 + $0x3f0] sm:$0xff]  }
  0x4f   :  { %1710 = vmatpush3.bf16.msra.mxu0 %v1891_v57  ;;  %v1951_v57 = vld [vmem:[#allocation6 + $0x330] sm:$0xff]  }
  0x50   :  { %1732 = vmatpush3.bf16.msra.mxu1 %v1892_v58  ;;  %1711 = vmatprep.subr.bf16.mxu0 %v1893_v59  ;;  %v1952_v58 = vld [vmem:[#allocation6 + $0x3b0] sm:$0xff]   ;;  %v1953_v59 = vld [vmem:[#allocation6 + $0x368] sm:$0xff]  }
  0x51   :  { %1733 = vmatprep.subr.bf16.mxu1 %v1894_v60  ;;  %v1954_v60 = vld [vmem:[#allocation6 + $0x3e8] sm:$0xff]  }
  0x53   :  { %1712 = vmatpush3.bf16.msra.mxu0 %v1895_v61  ;;  %v1955_v61 = vld [vmem:[#allocation6 + $0x328] sm:$0xff]  }
  0x54   :  { %1734 = vmatpush3.bf16.msra.mxu1 %v1896_v62  ;;  %1713 = vmatprep.subr.bf16.mxu0 %v1897_v63  ;;  %v1956_v62 = vld [vmem:[#allocation6 + $0x3a8] sm:$0xff]   ;;  %v1957_v63 = vld [vmem:[#allocation6 + $0x360] sm:$0xff]  }
  0x55   :  { %1735 = vmatprep.subr.bf16.mxu1 %v1898_v0  ;;  %v1958_v0 = vld [vmem:[#allocation6 + $0x3e0] sm:$0xff]  }
  0x57   :  { %1714 = vmatpush3.bf16.msra.mxu0 %v1899_v1  ;;  %v1959_v1 = vld [vmem:[#allocation6 + $0x320] sm:$0xff]  }
  0x58   :  { %1736 = vmatpush3.bf16.msra.mxu1 %v1900_v2  ;;  %1715 = vmatprep.subr.bf16.mxu0 %v1901_v3  ;;  %v1960_v2 = vld [vmem:[#allocation6 + $0x3a0] sm:$0xff]   ;;  %v1961_v3 = vld [vmem:[#allocation6 + $0x358] sm:$0xff]  }
  0x59   :  { %1737 = vmatprep.subr.bf16.mxu1 %v1902_v4  ;;  %v1962_v4 = vld [vmem:[#allocation6 + $0x3d8] sm:$0xff]  }
  0x5b   :  { %1716 = vmatpush3.bf16.msra.mxu0 %v1903_v5  ;;  %v1963_v5 = vld [vmem:[#allocation6 + $0x318] sm:$0xff]  }
  0x5c   :  { %1738 = vmatpush3.bf16.msra.mxu1 %v1904_v6  ;;  %1745 = vmatprep.subr.bf16.mxu0 %v1909_v13  ;;  %v1964_v6 = vld [vmem:[#allocation6 + $0x398] sm:$0xff]   ;;  %v1971_v13 = vld [vmem:[#allocation6 + $0x308] sm:$0xff]  }
  0x5d   :  { %1767 = vmatprep.subr.bf16.mxu1 %v1910_v14  ;;  %v1972_v14 = vld [vmem:[#allocation6 + $0x388] sm:$0xff]  }
  0x5e   :  { %1256 = vmatmul.mubr.bf16.vlgmr.msra.gmra.mxu0 %v1514_v8  ;;  %v1966_v8 = vld [vmem:[#allocation6 + $0x3d0] sm:$0xff]  }
  0x5f   :  { %1296 = vmatmul.mubr.bf16.vlgmr.msra.gmra.mxu1 %v1516_v11  ;;  %1746 = vmatpush3.bf16.msra.mxu0 %v1911_v15  ;;  %v1969_v11 = vld [vmem:[#allocation6 + $0x348] sm:$0xff]   ;;  %v1973_v15 = vld [vmem:[#allocation6 + $0x340] sm:$0xff]  }
  0x60   :  { %1768 = vmatpush3.bf16.msra.mxu1 %v1912_v16  ;;  %1747 = vmatprep.subr.bf16.mxu0 %v1913_v17  ;;  %v1974_v16 = vld [vmem:[#allocation6 + $0x3c0] sm:$0xff]  }
  0x61   :  { %1769 = vmatprep.subr.bf16.mxu1 %v1914_v18  ;;  %1335 = vmatprep.mubr.bf16.mxu0 %v1519_v48  ;;  %v1975_v17 = vld [vmem:[#allocation6 + $0x300] sm:$0xff]  }
  0x62   :  { %1375 = vmatprep.mubr.bf16.mxu1 %v1521_v50  ;;  %v1976_v18 = vld [vmem:[#allocation6 + $0x380] sm:$0xff]  }
  0x63   :  { %1748 = vmatpush3.bf16.msra.mxu0 %v1915_v19  ;;  %v61_v19 = vld [vmem:[#allocation4 + $0x30] sm:$0xff] }
  0x64   :  { %1770 = vmatpush3.bf16.msra.mxu1 %v1916_v20  ;;  %1749 = vmatprep.subr.bf16.mxu0 %v1917_v21  ;;  %v62_v20 = vld [vmem:[#allocation4 + $0x38] sm:$0xff]  ;;  %v1522_v21 = vcombine.low %v61_v19, %v61_v19 }
  0x65   :  { %1771 = vmatprep.subr.bf16.mxu1 %v1918_v22  ;;  %v1523_v22 = vcombine.high %v61_v19, %v61_v19 }
  0x67   :  { %1750 = vmatpush3.bf16.msra.mxu0 %v1919_v23  ;;  %v1524_v23 = vcombine.low %v62_v20, %v62_v20 }
  0x68   :  { %1772 = vmatpush3.bf16.msra.mxu1 %v1920_v24  ;;  %1751 = vmatprep.subr.bf16.mxu0 %v1921_v25  ;;  %v1525_v24 = vcombine.high %v62_v20, %v62_v20 }
  0x69   :  { %1773 = vmatprep.subr.bf16.mxu1 %v1922_v26 }
  0x6b   :  { %1752 = vmatpush3.bf16.msra.mxu0 %v1923_v27 }
  0x6c   :  { %1774 = vmatpush3.bf16.msra.mxu1 %v1924_v28  ;;  %1753 = vmatprep.subr.bf16.mxu0 %v1925_v29 }
  0x6d   :  { %1775 = vmatprep.subr.bf16.mxu1 %v1926_v30 }
  0x6f   :  { %1754 = vmatpush3.bf16.msra.mxu0 %v1927_v31 }
  0x70   :  { %1776 = vmatpush3.bf16.msra.mxu1 %v1928_v32  ;;  %1755 = vmatprep.subr.bf16.mxu0 %v1929_v33 }
  0x71   :  { %1777 = vmatprep.subr.bf16.mxu1 %v1930_v34 }
  0x73   :  { %1756 = vmatpush3.bf16.msra.mxu0 %v1931_v35 }
  0x74   :  { %1778 = vmatpush3.bf16.msra.mxu1 %v1932_v36  ;;  %1757 = vmatprep.subr.bf16.mxu0 %v1933_v37 }
  0x75   :  { %1779 = vmatprep.subr.bf16.mxu1 %v1934_v38 }
  0x77   :  { %1758 = vmatpush3.bf16.msra.mxu0 %v1935_v39 }
  0x78   :  { %1780 = vmatpush3.bf16.msra.mxu1 %v1936_v40  ;;  %1759 = vmatprep.subr.bf16.mxu0 %v1937_v41 }
  0x79   :  { %1781 = vmatprep.subr.bf16.mxu1 %v1938_v42 }
  0x7b   :  { %1760 = vmatpush3.bf16.msra.mxu0 %v1939_v43 }
  0x7c   :  { %1782 = vmatpush3.bf16.msra.mxu1 %v1940_v44  ;;  %1789 = vmatprep.subr.bf16.mxu0 %v1945_v51 }
  0x7d   :  { %1811 = vmatprep.subr.bf16.mxu1 %v1946_v52 }
  0x7e   :  { %1336 = vmatmul.mubr.bf16.vlgmr.msra.gmra.mxu0 %v1518_v47 }
  0x7f   :  { %1376 = vmatmul.mubr.bf16.vlgmr.msra.gmra.mxu1 %v1520_v49  ;;  %1790 = vmatpush3.bf16.msra.mxu0 %v1947_v53 }
  0x80   :  { %1812 = vmatpush3.bf16.msra.mxu1 %v1948_v54  ;;  %1791 = vmatprep.subr.bf16.mxu0 %v1949_v55 }
  0x81   :  { %1813 = vmatprep.subr.bf16.mxu1 %v1950_v56  ;;  %1415 = vmatprep.mubr.bf16.mxu0 %v1523_v22 }
  0x82   :  { %1455 = vmatprep.mubr.bf16.mxu1 %v1525_v24 }
  0x83   :  { %1792 = vmatpush3.bf16.msra.mxu0 %v1951_v57 }
  0x84   :  { %1814 = vmatpush3.bf16.msra.mxu1 %v1952_v58  ;;  %1793 = vmatprep.subr.bf16.mxu0 %v1953_v59 }
  0x85   :  { %1815 = vmatprep.subr.bf16.mxu1 %v1954_v60 }
  0x87   :  { %1794 = vmatpush3.bf16.msra.mxu0 %v1955_v61 }
  0x88   :  { %1816 = vmatpush3.bf16.msra.mxu1 %v1956_v62  ;;  %1795 = vmatprep.subr.bf16.mxu0 %v1957_v63 }
  0x89   :  { %1817 = vmatprep.subr.bf16.mxu1 %v1958_v0 }
  0x8b   :  { %1796 = vmatpush3.bf16.msra.mxu0 %v1959_v1 }
  0x8c   :  { %1818 = vmatpush3.bf16.msra.mxu1 %v1960_v2  ;;  %1797 = vmatprep.subr.bf16.mxu0 %v1961_v3 }
  0x8d   :  { %1819 = vmatprep.subr.bf16.mxu1 %v1962_v4 }
  0x8f   :  { %1798 = vmatpush3.bf16.msra.mxu0 %v1963_v5 }
  0x90   :  { %1820 = vmatpush3.bf16.msra.mxu1 %v1964_v6  ;;  %1799 = vmatprep.subr.bf16.mxu0 %v1965_v7  ;;  %v1654_v6 = vld [vmem:[%s2083_s2] ss:$0 sm:$0xff] }
  0x91   :  { %1821 = vmatprep.subr.bf16.mxu1 %v1966_v8 }
  0x93   :  { %1800 = vmatpush3.bf16.msra.mxu0 %v1967_v9 }
  0x94   :  { %1822 = vmatpush3.bf16.msra.mxu1 %v1968_v10  ;;  %1801 = vmatprep.subr.bf16.mxu0 %v1969_v11  ;;  %v1655_v10 = vld [vmem:[%s2084_s3] ss:$0 sm:$0xff] }
  0x95   :  { %1823 = vmatprep.subr.bf16.mxu1 %v1970_v12 }
  0x97   :  { %1802 = vmatpush3.bf16.msra.mxu0 %v1971_v13  ;;  %v1656_v13 = vld [vmem:[#allocation3] ss:$0 sm:$0xff] }
  0x98   :  { %1824 = vmatpush3.bf16.msra.mxu1 %v1972_v14  ;;  %1803 = vmatprep.subr.bf16.mxu0 %v1973_v15 }
  0x99   :  { %1825 = vmatprep.subr.bf16.mxu1 %v1974_v16 }
  0x9b   :  { %1804 = vmatpush3.bf16.msra.mxu0 %v1975_v17 }
  0x9c   :  { %1826 = vmatpush3.bf16.msra.mxu1 %v1976_v18 }
  0x9e   :  { %1416 = vmatmul.mubr.bf16.vlgmr.msra.gmra.mxu0 %v1522_v21 }
  0x9f   :  { %1456 = vmatmul.mubr.bf16.vlgmr.msra.gmra.mxu1 %v1524_v23 }
  0xfe   :  { %v1673_v25 = vpop.f32.mrf.mxu0 }
  0xff   :  { %v1695_v26 = vpop.f32.mrf.mxu1 }
 0x100   :  { %v1674_v27 = vpop.f32.mrf.mxu0 }
 0x101   :  { %v1696_v28 = vpop.f32.mrf.mxu1  ;;  %v1675_v29 = vadd.f32 %v1674_v27, %v1673_v25 }
 0x102   :  { %v1697_v30 = vadd.f32 %v1696_v28, %v1695_v26  ;;  %v1676_v31 = vpop.f32.mrf.mxu0 }
 0x103   :  { %v1698_v32 = vpop.f32.mrf.mxu1 }
 0x104   :  { %v1218_v33 = vadd.f32 %v1697_v30, %v1675_v29  ;;  %v1677_v34 = vpop.f32.mrf.mxu0 }
 0x105   :  { %v1699_v35 = vpop.f32.mrf.mxu1 }
 0x11e   :  { %v1717_v36 = vpop.f32.mrf.mxu0 }
 0x11f   :  { %v1739_v37 = vpop.f32.mrf.mxu1 }
 0x120   :  { %v1718_v38 = vpop.f32.mrf.mxu0 }
 0x121   :  { %v1740_v39 = vpop.f32.mrf.mxu1  ;;  %v1719_v52 = vadd.f32 %v1718_v38, %v1717_v36 }
 0x122   :  { %v1720_v40 = vpop.f32.mrf.mxu0  ;;  %v1741_v54 = vadd.f32 %v1740_v39, %v1739_v37 }
 0x123   :  { %v1742_v41 = vpop.f32.mrf.mxu1  ;;  %v1258_v53 = vadd.f32 %v1719_v52, %v1218_v33 }
 0x124   :  { %v1721_v42 = vpop.f32.mrf.mxu0 }
 0x125   :  { %v1743_v43 = vpop.f32.mrf.mxu1  ;;  %v1298_v56 = vadd.f32 %v1741_v54, %v1258_v53 }
 0x13e   :  { %v1761_v44 = vpop.f32.mrf.mxu0 }
 0x13f   :  { %v1783_v45 = vpop.f32.mrf.mxu1 }
 0x140   :  { %v1762_v46 = vpop.f32.mrf.mxu0 }
 0x141   :  { %v1784_v47 = vpop.f32.mrf.mxu1  ;;  %v1763_v55 = vadd.f32 %v1762_v46, %v1761_v44 }
 0x142   :  { %v1764_v48 = vpop.f32.mrf.mxu0  ;;  %v1785_v58 = vadd.f32 %v1784_v47, %v1783_v45 }
 0x143   :  { %v1786_v49 = vpop.f32.mrf.mxu1  ;;  %v1338_v57 = vadd.f32 %v1763_v55, %v1298_v56 }
 0x144   :  { %v1765_v50 = vpop.f32.mrf.mxu0 }
 0x145   :  { %v1787_v51 = vpop.f32.mrf.mxu1  ;;  %v1378_v62 = vadd.f32 %v1785_v58, %v1338_v57 }
 0x15e   :  { %v1805_v59 = vpop.f32.mrf.mxu0 }
 0x15f   :  { %v1827_v60 = vpop.f32.mrf.mxu1 }
 0x160   :  { %v1806_v61 = vpop.f32.mrf.mxu0 }
 0x161   :  { %v1807_v63 = vadd.f32 %v1806_v61, %v1805_v59  ;;  %v1828_v0 = vpop.f32.mrf.mxu1 }
 0x162   :  { %v1808_v1 = vpop.f32.mrf.mxu0  ;;  %v1829_v3 = vadd.f32 %v1828_v0, %v1827_v60 }
 0x163   :  { %v1418_v2 = vadd.f32 %v1807_v63, %v1378_v62  ;;  %v1830_v4 = vpop.f32.mrf.mxu1 }
 0x164   :  { %v1809_v5 = vpop.f32.mrf.mxu0 }
 0x165   :  { %v1458_v7 = vadd.f32 %v1829_v3, %v1418_v2  ;;  %v1831_v8 = vpop.f32.mrf.mxu1 }
 0x167   :  { %v1476_v9 = vadd.f32 %v1654_v6, %v1458_v7 }
 0x169   :  { %v1477_v11 = vmax.f32 %v1476_v9, 0.0 }
 0x16b   :  { %v1485_v12 = vmul.f32 %v1655_v10, %v1477_v11 }
 0x16d   :  { %1486 = vadd.xlane.f32.xlu0 %v1485_v12 }
 0x1f6   :  { %v1487_v14 = vpop.xlane.xlu0 %1486 }
 0x1f7   :  { %v1495_v15 = vadd.f32 %v1656_v13, %v1487_v14 }
 0x1f9   :  { %v1496_v16 = vsub.f32 0.0, %v1495_v15 }
 0x1fb   :  { %v1497_v17 = vmul.f32 1.442695, %v1496_v16 }
 0x1fd   :  { %1981 = vpow2.f32 %v1497_v17 }
 0x20a   :  { %v1982_v18 = vpop.eup %1981 }
 0x20b   :  { %v1499_v19 = vadd.f32 1.0, %v1982_v18 }
 0x20d   :  { %1983 = vrcp.f32 %v1499_v19 }
 0x21a   :  { %v1984_v20 = vpop.eup %1983 }
 0x21b   :  { %1503 = vst.msk [vmem:[%s2086_s5] sm:$0xff] %vm1502_vm0, %v1984_v20 }
 0x21c   :  { %1508 = vsyncpa [#allocation5], 1 }
 0x21d   :  { %1509 = vsyncpa [#allocation7], 1 }

</bundles_post_ra>
